<compile_context>
chip_gen: v7x
topology: tpu7x:2x2x1
jax: 0.10.0
libtpu: 0.0.40
codegen_flags: <defaults>
</compile_context>

<pallas_src>
import jax
import jax.numpy as jnp
from jax.experimental import pallas as pl
from jax.experimental.pallas import tpu as pltpu


def _autoencoder_kernel(x_ref, w1_ref, b1_ref, w2_ref, b2_ref, out_ref):
    # Cast the activation tile to the (bf16) compute dtype in-kernel: the HBM copy
    # stays f32 and no separate XLA cast pass over x is needed.
    x = x_ref[...].astype(w1_ref.dtype)
    # encoder: Linear(input_dim, encoding_dim) + ReLU  (MXU matmul, f32 accumulation)
    h = jnp.dot(x, w1_ref[...], preferred_element_type=jnp.float32)
    h = jnp.maximum(h + b1_ref[...], 0.0)
    # decoder: Linear(encoding_dim, input_dim) + Sigmoid
    y = jnp.dot(h.astype(w2_ref.dtype), w2_ref[...],
                preferred_element_type=jnp.float32)
    y = y + b2_ref[...]
    # sigmoid(y) == 0.5 * (1 + tanh(y / 2)): one EUP transcendental, bounded output.
    out_ref[...] = (0.5 * (jnp.tanh(0.5 * y) + 1.0)).astype(out_ref.dtype)


def _round_up(n, m):
    return (n + m - 1) // m * m


def autoencoder_forward(x, w1, b1, w2, b2, *, tile_b=1024,
                        compute_dtype=jnp.bfloat16, out_dtype=jnp.bfloat16):
    """Forward pass of the PyTorch Autoencoder.

    Args:
      x:  (B, input_dim) activations (any float dtype; cast to bf16 inside the kernel).
      w1: (encoding_dim, input_dim)  PyTorch nn.Linear weight of the encoder.
      b1: (encoding_dim,)            encoder bias.
      w2: (input_dim, encoding_dim)  decoder weight.
      b2: (input_dim,)               decoder bias.
    Returns:
      (B, input_dim) sigmoid(decoder(relu(encoder(x)))), in `out_dtype` (default bf16).
    """
    B, D = x.shape
    E = w1.shape[0]

    # Hidden dim padded to a lane-dense multiple of 128 (weights/bias only; KB-scale).
    E_pad = _round_up(E, 128)

    # Batch tile: multiple of 8 (sublane), clamped so the grid has ~4 steps when the
    # batch allows it (>= 2 per TensorCore on v7x). Partial last block is masked by
    # Pallas, so B need not be a multiple of tile_b.
    tile_b = max(8, min(_round_up(tile_b, 8), _round_up(pl.cdiv(B, 4), 8)))
    grid = (pl.cdiv(B, tile_b),)

    # Weight prep (tiny, one-time): transpose to (in, out) layout, cast to bf16,
    # zero-pad the hidden dim. Zero padding is mathematically inert: padded hidden
    # columns get zero weights + zero bias and zero decoder rows.
    w1_t = jnp.pad(w1.T.astype(compute_dtype), ((0, 0), (0, E_pad - E)))   # (D, E_pad)
    w2_t = jnp.pad(w2.T.astype(compute_dtype), ((0, E_pad - E), (0, 0)))   # (E_pad, D)
    b1_p = jnp.pad(b1.astype(jnp.float32), (0, E_pad - E)).reshape(1, E_pad)
    b2_p = b2.astype(jnp.float32).reshape(1, D)

    return pl.pallas_call(
        _autoencoder_kernel,
        out_shape=jax.ShapeDtypeStruct((B, D), out_dtype),
        grid_spec=pltpu.PrefetchScalarGridSpec(
            num_scalar_prefetch=0,
            grid=grid,
            in_specs=[
                pl.BlockSpec((tile_b, D), lambda i: (i, 0)),     # x tile (D = full dim)
                pl.BlockSpec((D, E_pad), lambda i: (0, 0)),      # W1^T (resident)
                pl.BlockSpec((1, E_pad), lambda i: (0, 0)),      # b1
                pl.BlockSpec((E_pad, D), lambda i: (0, 0)),      # W2^T (resident)
                pl.BlockSpec((1, D), lambda i: (0, 0)),          # b2
            ],
            out_specs=pl.BlockSpec((tile_b, D), lambda i: (i, 0)),
        ),
        compiler_params=pltpu.CompilerParams(
            dimension_semantics=("parallel",),   # batch axis shards across TCs on v7x
        ),
    )(x, w1_t, b1_p, w2_t, b2_p)


def _init_linear(key, in_features, out_features, dtype=jnp.float32):
    """Deterministic init mirroring nn.Linear's uniform(-1/sqrt(in), 1/sqrt(in))."""
    kw, kb = jax.random.split(key)
    bound = 1.0 / jnp.sqrt(jnp.array(in_features, dtype))
    w = jax.random.uniform(kw, (out_features, in_features), dtype, -bound, bound)
    b = jax.random.uniform(kb, (out_features,), dtype, -bound, bound)
    return w, b


if __name__ == "__main__":
    # Batch deliberately not a multiple of the tile: exercises Pallas' masked partial
    # last block (no wrapper-side batch padding). tile_b auto-clamps to 256 here,
    # giving a 4-step grid (2 steps per TC on v7x).
    batch = 1000
    input_dim = 64
    encoding_dim = 32

    key = jax.random.PRNGKey(0)
    kx, k1, k2 = jax.random.split(key, 3)

    x = jax.random.normal(kx, (batch, input_dim), jnp.float32)

    # Parameters in PyTorch nn.Linear layout: W is (out, in), b is (out,).
    w1, b1 = _init_linear(k1, input_dim, encoding_dim)   # encoder
    w2, b2 = _init_linear(k2, encoding_dim, input_dim)   # decoder

    out = autoencoder_forward(x, w1, b1, w2, b2)
    out = jax.block_until_ready(out)

    # Pure-JAX f32 reference (same math as the PyTorch forward pass).
    h_ref = jnp.maximum(x @ w1.T + b1, 0.0)
    y_ref = jax.nn.sigmoid(h_ref @ w2.T + b2)

    assert out.shape == (batch, input_dim)
    max_err = float(jnp.max(jnp.abs(out.astype(jnp.float32) - y_ref)))
    # bf16 matmul inputs + bf16 output on [0,1] values => loose-but-safe tolerance.
    assert max_err < 2e-2, f"max abs err {max_err}"

    print("KERNEL_OK")
</pallas_src>

<mosaic_0001>
module attributes {stable_mosaic.version = 11 : i64} {
  func.func @_autoencoder_kernel(%arg0: i32, %arg1: memref<256x64xf32, #tpu.memory_space<vmem>>, %arg2: memref<64x128xbf16, #tpu.memory_space<vmem>>, %arg3: memref<1x128xf32, #tpu.memory_space<vmem>>, %arg4: memref<128x64xbf16, #tpu.memory_space<vmem>>, %arg5: memref<1x64xf32, #tpu.memory_space<vmem>>, %arg6: memref<256x64xbf16, #tpu.memory_space<vmem>>) attributes {dimension_semantics = [#tpu.dimension_semantics<parallel>], iteration_bounds = array<i64: 4>, scalar_prefetch = 0 : i64, scratch_operands = 0 : i64, tpu.core_type = #tpu.core_type<tc>, window_params = [{transform_indices = @transform_0, window_bounds = array<i64: 256, 64>}, {pipeline_mode = #tpu.pipeline_mode<synchronous>, transform_indices = @transform_1, window_bounds = array<i64: 64, 128>}, {pipeline_mode = #tpu.pipeline_mode<synchronous>, transform_indices = @transform_2, window_bounds = array<i64: 1, 128>}, {pipeline_mode = #tpu.pipeline_mode<synchronous>, transform_indices = @transform_3, window_bounds = array<i64: 128, 64>}, {pipeline_mode = #tpu.pipeline_mode<synchronous>, transform_indices = @transform_4, window_bounds = array<i64: 1, 64>}, {transform_indices = @transform_5, window_bounds = array<i64: 256, 64>}]} {
    %c0 = arith.constant 0 : index
    %c0_0 = arith.constant 0 : index
    %0 = vector.load %arg1[%c0, %c0_0] : memref<256x64xf32, #tpu.memory_space<vmem>>, vector<256x64xf32>
    %1 = arith.truncf %0 : vector<256x64xf32> to vector<256x64xbf16>
    %c0_1 = arith.constant 0 : index
    %c0_2 = arith.constant 0 : index
    %2 = vector.load %arg2[%c0_1, %c0_2] : memref<64x128xbf16, #tpu.memory_space<vmem>>, vector<64x128xbf16>
    %cst = arith.constant dense<0.000000e+00> : vector<256x128xf32>
    %3 = tpu.matmul %1, %2, %cst {dimension_numbers = #tpu.dot_dimension_numbers<[1], [0], [0], [1], [0, 0, 1, 1], [], []>} : vector<256x64xbf16>, vector<64x128xbf16>, vector<256x128xf32> -> vector<256x128xf32>
    %c0_3 = arith.constant 0 : index
    %c0_4 = arith.constant 0 : index
    %4 = vector.load %arg3[%c0_3, %c0_4] : memref<1x128xf32, #tpu.memory_space<vmem>>, vector<1x128xf32>
    %5 = vector.broadcast %4 : vector<1x128xf32> to vector<256x128xf32>
    %6 = arith.addf %3, %5 : vector<256x128xf32>
    %cst_5 = arith.constant 0.000000e+00 : f32
    %7 = vector.broadcast %cst_5 : f32 to vector<256x128xf32>
    %8 = arith.maximumf %6, %7 : vector<256x128xf32>
    %9 = arith.truncf %8 : vector<256x128xf32> to vector<256x128xbf16>
    %c0_6 = arith.constant 0 : index
    %c0_7 = arith.constant 0 : index
    %10 = vector.load %arg4[%c0_6, %c0_7] : memref<128x64xbf16, #tpu.memory_space<vmem>>, vector<128x64xbf16>
    %cst_8 = arith.constant dense<0.000000e+00> : vector<256x64xf32>
    %11 = tpu.matmul %9, %10, %cst_8 {dimension_numbers = #tpu.dot_dimension_numbers<[1], [0], [0], [1], [0, 0, 1, 1], [], []>} : vector<256x128xbf16>, vector<128x64xbf16>, vector<256x64xf32> -> vector<256x64xf32>
    %c0_9 = arith.constant 0 : index
    %c0_10 = arith.constant 0 : index
    %12 = vector.load %arg5[%c0_9, %c0_10] : memref<1x64xf32, #tpu.memory_space<vmem>>, vector<1x64xf32>
    %13 = vector.broadcast %12 : vector<1x64xf32> to vector<256x64xf32>
    %14 = arith.addf %11, %13 : vector<256x64xf32>
    %cst_11 = arith.constant 5.000000e-01 : f32
    %15 = vector.broadcast %cst_11 : f32 to vector<256x64xf32>
    %16 = arith.mulf %15, %14 : vector<256x64xf32>
    %17 = math.tanh %16 : vector<256x64xf32>
    %cst_12 = arith.constant 1.000000e+00 : f32
    %18 = vector.broadcast %cst_12 : f32 to vector<256x64xf32>
    %19 = arith.addf %17, %18 : vector<256x64xf32>
    %cst_13 = arith.constant 5.000000e-01 : f32
    %20 = vector.broadcast %cst_13 : f32 to vector<256x64xf32>
    %21 = arith.mulf %20, %19 : vector<256x64xf32>
    %22 = arith.truncf %21 : vector<256x64xf32> to vector<256x64xbf16>
    %c0_14 = arith.constant 0 : index
    %c0_15 = arith.constant 0 : index
    %23 = vector.load %arg6[%c0_14, %c0_15] : memref<256x64xbf16, #tpu.memory_space<vmem>>, vector<256x64xbf16>
    tpu.vector_store %arg6[%c0_14, %c0_15], %22 {strides = array<i32>} : memref<256x64xbf16, #tpu.memory_space<vmem>>, vector<256x64xbf16>,
    return
  }
  func.func @transform_0(%arg0: i32) -> (i32, i32) {
    %c0_i32 = arith.constant 0 : i32
    %c0_i32_0 = arith.constant 0 : i32
    return %arg0, %c0_i32 : i32, i32
  }
  func.func @transform_1(%arg0: i32) -> (i32, i32) {
    %c0_i32 = arith.constant 0 : i32
    %c0_i32_0 = arith.constant 0 : i32
    %c0_i32_1 = arith.constant 0 : i32
    return %c0_i32, %c0_i32_0 : i32, i32
  }
  func.func @transform_2(%arg0: i32) -> (i32, i32) {
    %c0_i32 = arith.constant 0 : i32
    %c0_i32_0 = arith.constant 0 : i32
    %c0_i32_1 = arith.constant 0 : i32
    return %c0_i32, %c0_i32_0 : i32, i32
  }
  func.func @transform_3(%arg0: i32) -> (i32, i32) {
    %c0_i32 = arith.constant 0 : i32
    %c0_i32_0 = arith.constant 0 : i32
    %c0_i32_1 = arith.constant 0 : i32
    return %c0_i32, %c0_i32_0 : i32, i32
  }
  func.func @transform_4(%arg0: i32) -> (i32, i32) {
    %c0_i32 = arith.constant 0 : i32
    %c0_i32_0 = arith.constant 0 : i32
    %c0_i32_1 = arith.constant 0 : i32
    return %c0_i32, %c0_i32_0 : i32, i32
  }
  func.func @transform_5(%arg0: i32) -> (i32, i32) {
    %c0_i32 = arith.constant 0 : i32
    %c0_i32_0 = arith.constant 0 : i32
    return %arg0, %c0_i32 : i32, i32
  }
}

</mosaic_0001>

<bundles_post_ra>
// kernel: tpu_custom_call.1
= control target key start
LH: loop header
LB: loop body
LE: loop exit
PB: predicated region body
PF: predicated region fallthrough
CT: control target
= control target key end

     0   :  { %s2002_s18 = smov 0   ;;  %s2004_s19 = smov 0   ;;  %s2401_s0 = inlined_call_operand.vmem [shape: f32[1000,64], index: 0, kind: input, shape index: {}]   ;;  %s2402_s1 = inlined_call_operand.vmem [shape: bf16[64,128], index: 1, kind: input, shape index: {}]   ;;  %s2403_s2 = inlined_call_operand.vmem [shape: f32[1,128], index: 2, kind: input, shape index: {}]   ;;  %s2404_s3 = inlined_call_operand.vmem [shape: bf16[128,64], index: 3, kind: input, shape index: {}]   ;;  %s2405_s4 = inlined_call_operand.vmem [shape: f32[1,64], index: 4, kind: input, shape index: {}]   ;;  %s2406_s5 = inlined_call_operand.vmem [shape: bf16[1000,64], index: 5, kind: output, shape index: {}]  }
   0x1   :  { %s2006_s20 = smov 0  }
   0x2 LB: > { %s2015_s21 = sadd.s32 4294967295, %s1938_s20   ;;  %s2017_s22 = sadd.s32 1, %s1938_s20   ;;  %s1938_s20 = sphi %s2006_s20, %s2413_s20   ;;  %s1934_s19 = sphi %s2004_s19, %s2412_s19   ;;  %s1930_s18 = sphi %s2002_s18, %s2411_s18  }
   0x3   : > { %s129_s23 = ssub.s32 %s1938_s20, %s2017_s22  ;;  %s132_s24 = sadd.s32 1, %s1934_s19 }
   0x4   : > { %p130_p0 = scmp.eq.s32.totalorder %s129_s23, 0  ;;  %p142_p1 = scmp.ne.s32.totalorder %s1934_s19, %s1930_s18 }
   0x5   : > { %p143_p2 = scmp.eq.s32.totalorder %s2015_s21, 3  ;;  %p1454_p3 = scmp.ge.s32.totalorder %s1938_s20, 1 }
   0x6   : > { %s2025_s25 = scalar_select %p130_p0, %s1934_s19, %s132_s24  }
   0x7   : > { %p2027_p4 = por %p143_p2, %p142_p1  ;;  %p196_p5 = scmp.lt.s32.totalorder %s1938_s20, 5 }
   0x9   : > { %p197_p6 = pnand %p1454_p3, %p196_p5 }
   0xa   : > { %v1808_v0 = vld [vmem:[%s2402_s1] sm:$0xff] (!%p197_p6)   ;;  %s2035_s29 = sshll.u32 (!%p197_p6), %s2015_s21, 5  ;;  %v1809_v1 = vld [vmem:[%s2402_s1 + $0x8] sm:$0xff] (!%p197_p6)   ;;  %v1810_v2 = vld [vmem:[%s2402_s1 + $0x10] sm:$0xff] (!%p197_p6)   ;;  %vm334_vm0 = vcmask (!%p197_p6), 523264   ;;  %s224_s20 = sand.u32 (!%p197_p6), 1, %s1930_s18  }
   0xb   : > { %200 = sbr.rel (%p197_p6) target bundleno = 612 (0x264), region = 40  ;;  %p232_p7 = scmp.lt.s32.totalorder (!%p197_p6), %s2035_s29, 124  ;;  %1616 = vmatprep.subr.bf16.mxu0 (!%p197_p6), %v1808_v0  ;;  %v1812_v3 = vld [vmem:[%s2404_s3] sm:$0xff] (!%p197_p6)   ;;  %v1813_v4 = vld [vmem:[%s2404_s3 + $0x8] sm:$0xff] (!%p197_p6)   ;;  %v1811_v7 = vld [vmem:[%s2402_s1 + $0x18] sm:$0xff] (!%p197_p6)   ;;  %vm1080_vm1 = vcmask (!%p197_p6), 519168  }
   0xc   : > { %1617 = vmatpush3.bf16.msra.mxu0 (!%p197_p6), %v1808_v0  ;;  %1704 = vmatprep.subr.bf16.mxu1 (!%p197_p6), %v1812_v3  ;;  %v1814_v9 = vld [vmem:[%s2404_s3 + $0x10] sm:$0xff] (!%p197_p6)   ;;  %v1815_v19 = vld [vmem:[%s2404_s3 + $0x18] sm:$0xff] (!%p197_p6)   ;;  %v1816_v21 = vld [vmem:[%s2404_s3 + $0x20] sm:$0xff] (!%p197_p6)   ;;  %s1455_s23 = sshll.u32 (!%p197_p6), %s224_s20, 7 }
   0xd   : > { %1618 = vmatprep.subr.bf16.mxu0 (!%p197_p6), %v1809_v1  ;;  %1712 = vmatpush3.bf16.msra.mxu1 (!%p197_p6), %v1812_v3  ;;  %v1817_v24 = vld [vmem:[%s2404_s3 + $0x28] sm:$0xff] (!%p197_p6)   ;;  %v1818_v58 = vld [vmem:[%s2404_s3 + $0x30] sm:$0xff] (!%p197_p6)   ;;  %v1819_v59 = vld [vmem:[%s2404_s3 + $0x38] sm:$0xff] (!%p197_p6)   ;;  %s2180_s18 = scalar_lea.vmem (!%p197_p6), [#allocation2], %s1455_s23  }
   0xe   : > { %1705 = vmatprep.subr.bf16.mxu1 (!%p197_p6), %v1813_v4  ;;  %v2128_v60 = vld [vmem:[%s2403_s2] ss:$0 sm:$0xff] (!%p197_p6) }
  0x10   : > { %1619 = vmatpush3.bf16.msra.mxu0 (!%p197_p6), %v1809_v1 }
  0x11   : > { %1620 = vmatprep.subr.bf16.mxu0 (!%p197_p6), %v1810_v2  ;;  %1713 = vmatpush3.bf16.msra.mxu1 (!%p197_p6), %v1813_v4 }
  0x12   : > { %s233_s9 = scalar_select %p232_p7, %s2035_s29, 124  ;;  %1706 = vmatprep.subr.bf16.mxu1 %v1814_v9 }
  0x13   : > { %s1121_s24 = ssub.s32 (%p2027_p4), 125, %s2035_s29  ;;  %s1569_s27 = sshll.u32 (%p2027_p4), %s2015_s21, 7 }
  0x14   : > { %s1457_s12 = sshll.u32 %s233_s9, 3  ;;  %1621 = vmatpush3.bf16.msra.mxu0 %v1810_v2  ;;  %p1122_p8 = scmp.lt.s32.totalorder (%p2027_p4), %s1121_s24, 32 }
  0x15   : > { %s2051_s15 = scalar_lea.vmem %s2401_s0, %s1457_s12  ;;  %1622 = vmatprep.subr.bf16.mxu0 %v1811_v7  ;;  %1714 = vmatpush3.bf16.msra.mxu1 %v1814_v9  ;;  %s2273_s6 = scalar_lea.vmem (%p2027_p4), %s2406_s5, %s1569_s27  }
  0x16   : > { %v247_v5 = vld [vmem:[%s2051_s15] sm:$0xff]  ;;  %v248_v6 = vld [vmem:[%s2051_s15 + $0x8] sm:$0xff]  ;;  %v249_v10 = vld [vmem:[%s2051_s15 + $0x10] sm:$0xff]  ;;  %1707 = vmatprep.subr.bf16.mxu1 %v1815_v19 }
  0x17   : > { %v279_v8 = vpack.c.bf16 %v248_v6, %v247_v5  ;;  %v250_v11 = vld [vmem:[%s2051_s15 + $0x18] sm:$0xff]  ;;  %v251_v12 = vld [vmem:[%s2051_s15 + $0x20] sm:$0xff]  ;;  %v252_v13 = vld [vmem:[%s2051_s15 + $0x28] sm:$0xff] }
  0x18   : > { %v280_v14 = vpack.c.bf16 %v250_v11, %v249_v10  ;;  %1623 = vmatpush3.bf16.msra.mxu0 %v1811_v7  ;;  %v281_v15 = vpack.c.bf16 %v252_v13, %v251_v12  ;;  %v253_v16 = vld [vmem:[%s2051_s15 + $0x30] sm:$0xff]  ;;  %v254_v17 = vld [vmem:[%s2051_s15 + $0x38] sm:$0xff]  ;;  %v255_v18 = vld [vmem:[%s2051_s15 + $0x40] sm:$0xff] }
  0x19   : > { %1624 = vmatprep.mubr.msk.bf16.mxu0 %vm334_vm0, %v279_v8  ;;  %1656 = vmatprep.subr.bf16.mxu0 %v1812_v3  ;;  %v256_v20 = vld [vmem:[%s2051_s15 + $0x48] sm:$0xff]  ;;  %v282_v22 = vpack.c.bf16 %v254_v17, %v253_v16  ;;  %v257_v25 = vld [vmem:[%s2051_s15 + $0x50] sm:$0xff]  ;;  %v258_v26 = vld [vmem:[%s2051_s15 + $0x58] sm:$0xff] }
  0x1a   : > { %1715 = vmatpush3.bf16.msra.mxu1 %v1815_v19  ;;  %v283_v23 = vpack.c.bf16 %v256_v20, %v255_v18  ;;  %v259_v27 = vld [vmem:[%s2051_s15 + $0x60] sm:$0xff]  ;;  %v260_v28 = vld [vmem:[%s2051_s15 + $0x68] sm:$0xff]  ;;  %v284_v29 = vpack.c.bf16 %v258_v26, %v257_v25  ;;  %v261_v31 = vld [vmem:[%s2051_s15 + $0x70] sm:$0xff] }
  0x1b   : > { %1625 = vmatmul.mubr.msk.bf16.vlgmr.msra.gmra.mrb[0].mxu0 %vm334_vm0, %v280_v14  ;;  %1708 = vmatprep.subr.bf16.mxu1 %v1816_v21  ;;  %v285_v30 = vpack.c.bf16 %v260_v28, %v259_v27  ;;  %v262_v32 = vld [vmem:[%s2051_s15 + $0x78] sm:$0xff]  ;;  %v263_v33 = vld [vmem:[%s2051_s15 + $0x80] sm:$0xff]  ;;  %v264_v34 = vld [vmem:[%s2051_s15 + $0x88] sm:$0xff] }
  0x1c   : > { %1628 = vmatprep.mubr.msk.bf16.mxu0 %vm334_vm0, %v281_v15  ;;  %1657 = vmatpush3.bf16.msra.mxu0 %v1812_v3  ;;  %v286_v35 = vpack.c.bf16 %v262_v32, %v261_v31  ;;  %v287_v36 = vpack.c.bf16 %v264_v34, %v263_v33  ;;  %v265_v37 = vld [vmem:[%s2051_s15 + $0x90] sm:$0xff]  ;;  %v266_v38 = vld [vmem:[%s2051_s15 + $0x98] sm:$0xff]  ;;  %v267_v39 = vld [vmem:[%s2051_s15 + $0xa0] sm:$0xff] }
  0x1d   : > { %1658 = vmatprep.subr.bf16.mxu0 %v1813_v4  ;;  %v268_v40 = vld [vmem:[%s2051_s15 + $0xa8] sm:$0xff]  ;;  %v288_v41 = vpack.c.bf16 %v266_v38, %v265_v37  ;;  %v269_v43 = vld [vmem:[%s2051_s15 + $0xb0] sm:$0xff]  ;;  %v270_v44 = vld [vmem:[%s2051_s15 + $0xb8] sm:$0xff] }
  0x1e   : > { %1716 = vmatpush3.bf16.msra.mxu1 %v1816_v21  ;;  %v289_v42 = vpack.c.bf16 %v268_v40, %v267_v39  ;;  %v271_v45 = vld [vmem:[%s2051_s15 + $0xc0] sm:$0xff]  ;;  %v272_v46 = vld [vmem:[%s2051_s15 + $0xc8] sm:$0xff]  ;;  %v290_v47 = vpack.c.bf16 %v270_v44, %v269_v43  ;;  %v273_v49 = vld [vmem:[%s2051_s15 + $0xd0] sm:$0xff] }
  0x1f   : > { %1709 = vmatprep.subr.bf16.mxu1 %v1817_v24  ;;  %v291_v48 = vpack.c.bf16 %v272_v46, %v271_v45  ;;  %v274_v50 = vld [vmem:[%s2051_s15 + $0xd8] sm:$0xff]  ;;  %v275_v51 = vld [vmem:[%s2051_s15 + $0xe0] sm:$0xff]  ;;  %v276_v52 = vld [vmem:[%s2051_s15 + $0xe8] sm:$0xff] }
  0x20   : > { %1659 = vmatpush3.bf16.msra.mxu0 %v1813_v4  ;;  %v292_v53 = vpack.c.bf16 %v274_v50, %v273_v49  ;;  %v293_v54 = vpack.c.bf16 %v276_v52, %v275_v51  ;;  %v277_v55 = vld [vmem:[%s2051_s15 + $0xf0] sm:$0xff]  ;;  %v278_v56 = vld [vmem:[%s2051_s15 + $0xf8] sm:$0xff] }
  0x21   : > { %1660 = vmatprep.subr.bf16.mxu0 %v1814_v9  ;;  %v294_v57 = vpack.c.bf16 %v278_v56, %v277_v55 }
  0x22   : > { %1717 = vmatpush3.bf16.msra.mxu1 %v1817_v24 }
  0x23   : > { %1629 = vmatmul.mubr.msk.bf16.gmra.mrb[4].mxu0 %vm334_vm0, %v282_v22  ;;  %1710 = vmatprep.subr.bf16.mxu1 %v1818_v58 }
  0x24   : > { %1632 = vmatprep.mubr.msk.bf16.mxu0 %vm334_vm0, %v283_v23  ;;  %1661 = vmatpush3.bf16.msra.mxu0 %v1814_v9 }
  0x25   : > { %1662 = vmatprep.subr.bf16.mxu0 %v1815_v19 }
  0x26   : > { %1718 = vmatpush3.bf16.msra.mxu1 %v1818_v58 }
  0x27   : > { %1711 = vmatprep.subr.bf16.mxu1 %v1819_v59 }
  0x28   : > { %1663 = vmatpush3.bf16.msra.mxu0 %v1815_v19 }
  0x29   : > { %1664 = vmatprep.subr.bf16.mxu0 %v1816_v21 }
  0x2a   : > { %1719 = vmatpush3.bf16.msra.mxu1 %v1819_v59 }
  0x2b   : > { %1633 = vmatmul.mubr.msk.bf16.gmra.mrb[8].mxu0 %vm334_vm0, %v284_v29 }
  0x2c   : > { %1636 = vmatprep.mubr.msk.bf16.mxu0 %vm334_vm0, %v285_v30  ;;  %1665 = vmatpush3.bf16.msra.mxu0 %v1816_v21 }
  0x2d   : > { %1666 = vmatprep.subr.bf16.mxu0 %v1817_v24 }
  0x30   : > { %1667 = vmatpush3.bf16.msra.mxu0 %v1817_v24 }
  0x31   : > { %1668 = vmatprep.subr.bf16.mxu0 %v1818_v58 }
  0x33   : > { %1637 = vmatmul.mubr.msk.bf16.gmra.mrb[12].mxu0 %vm334_vm0, %v286_v35 }
  0x34   : > { %1640 = vmatprep.mubr.msk.bf16.mxu0 %vm334_vm0, %v287_v36  ;;  %1669 = vmatpush3.bf16.msra.mxu0 %v1818_v58 }
  0x35   : > { %1670 = vmatprep.subr.bf16.mxu0 %v1819_v59 }
  0x38   : > { %1671 = vmatpush3.bf16.msra.mxu0 %v1819_v59 }
  0x3b   : > { %1641 = vmatmul.mubr.msk.bf16.gmra.mrb[16].mxu0 %vm334_vm0, %v288_v41 }
  0x3c   : > { %1644 = vmatprep.mubr.msk.bf16.mxu0 %vm334_vm0, %v289_v42 }
  0x43   : > { %1645 = vmatmul.mubr.msk.bf16.gmra.mrb[20].mxu0 %vm334_vm0, %v290_v47 }
  0x44   : > { %1648 = vmatprep.mubr.msk.bf16.mxu0 %vm334_vm0, %v291_v48 }
  0x4b   : > { %1649 = vmatmul.mubr.msk.bf16.gmra.mrb[24].mxu0 %vm334_vm0, %v292_v53 }
  0x4c   : > { %1652 = vmatprep.mubr.msk.bf16.mxu0 %vm334_vm0, %v293_v54 }
  0x53   : > { %1653 = vmatmul.mubr.msk.bf16.gmra.mrb[28].mxu0 %vm334_vm0, %v294_v57 }
  0xee   : > { %v1626_v61 = vpop.f32.mrb[0].mxu0 }
  0xef   : > { %v426_v62 = vadd.f32 %v1626_v61, %v2128_v60  ;;  %v417_v63 = vpop.f32.mrb[1].mxu0 }
  0xf0   : > { %v418_v0 = vadd.f32 %v2128_v60, %v417_v63  ;;  %v1627_v1 = vpop.f32.mrb[2].mxu0 }
  0xf1   : > { %v429_v2 = vadd.f32 %v1627_v1, %v2128_v60  ;;  %v420_v3 = vpop.f32.mrb[3].mxu0  ;;  %v546_v5 = vmax.f32 %v426_v62, 0.0 }
  0xf2   : > { %v421_v4 = vadd.f32 %v2128_v60, %v420_v3  ;;  %v544_v7 = vmax.f32 %v418_v0, 0.0 }
  0xf3   : > { %v547_v6 = vmax.f32 %v429_v2, 0.0 }
  0xf4   : > { %v545_v8 = vmax.f32 %v421_v4, 0.0 }
  0xf5   : > { %v577_v9 = vpack.c.bf16 %v547_v6, %v546_v5 }
  0xf6   : > { %v576_v10 = vpack.c.bf16 %v545_v8, %v544_v7  ;;  %v1630_v11 = vpop.f32.mrb[4].mxu0 }
  0xf7   : > { %v442_v12 = vadd.f32 %v1630_v11, %v2128_v60  ;;  %v433_v13 = vpop.f32.mrb[5].mxu0 }
  0xf8   : > { %v434_v14 = vadd.f32 %v2128_v60, %v433_v13  ;;  %v1631_v15 = vpop.f32.mrb[6].mxu0  ;;  %1672 = vmatprep.mubr.bf16.mxu0 %v576_v10 }
  0xf9   : > { %v445_v16 = vadd.f32 %v1631_v15, %v2128_v60  ;;  %v436_v17 = vpop.f32.mrb[7].mxu0  ;;  %1673 = vmatmul.mubr.bf16.vlgmr.msra.gmra.mrb[32].mxu0 %v577_v9  ;;  %v550_v19 = vmax.f32 %v442_v12, 0.0 }
  0xfa   : > { %v437_v18 = vadd.f32 %v2128_v60, %v436_v17  ;;  %v548_v21 = vmax.f32 %v434_v14, 0.0 }
  0xfb   : > { %v551_v20 = vmax.f32 %v445_v16, 0.0 }
  0xfc   : > { %v549_v22 = vmax.f32 %v437_v18, 0.0 }
  0xfd   : > { %v579_v23 = vpack.c.bf16 %v551_v20, %v550_v19 }
  0xfe   : > { %v1634_v24 = vpop.f32.mrb[8].mxu0  ;;  %v578_v25 = vpack.c.bf16 %v549_v22, %v548_v21 }
  0xff   : > { %v458_v26 = vadd.f32 %v1634_v24, %v2128_v60  ;;  %v449_v27 = vpop.f32.mrb[9].mxu0 }
 0x100   : > { %v450_v28 = vadd.f32 %v2128_v60, %v449_v27  ;;  %v1635_v29 = vpop.f32.mrb[10].mxu0  ;;  %1676 = vmatprep.mubr.bf16.mxu1 %v578_v25 }
 0x101   : > { %v461_v30 = vadd.f32 %v1635_v29, %v2128_v60  ;;  %v452_v31 = vpop.f32.mrb[11].mxu0  ;;  %1677 = vmatmul.mubr.bf16.vlgmr.msra.gmra.mrb[0].mxu1 %v579_v23  ;;  %v554_v33 = vmax.f32 %v458_v26, 0.0 }
 0x102   : > { %v453_v32 = vadd.f32 %v2128_v60, %v452_v31  ;;  %v552_v35 = vmax.f32 %v450_v28, 0.0 }
 0x103   : > { %v555_v34 = vmax.f32 %v461_v30, 0.0 }
 0x104   : > { %v553_v36 = vmax.f32 %v453_v32, 0.0 }
 0x105   : > { %v581_v37 = vpack.c.bf16 %v555_v34, %v554_v33 }
 0x106   : > { %v580_v38 = vpack.c.bf16 %v553_v36, %v552_v35  ;;  %v1638_v39 = vpop.f32.mrb[12].mxu0 }
 0x107   : > { %v474_v40 = vadd.f32 %v1638_v39, %v2128_v60  ;;  %v465_v41 = vpop.f32.mrb[13].mxu0 }
 0x108   : > { %v466_v42 = vadd.f32 %v2128_v60, %v465_v41  ;;  %v1639_v43 = vpop.f32.mrb[14].mxu0  ;;  %1680 = vmatprep.mubr.bf16.mxu1 %v580_v38 }
 0x109   : > { %v477_v44 = vadd.f32 %v1639_v43, %v2128_v60  ;;  %v468_v45 = vpop.f32.mrb[15].mxu0  ;;  %1681 = vmatmul.mubr.bf16.gmra.mrb[4].mxu1 %v581_v37  ;;  %v558_v47 = vmax.f32 %v474_v40, 0.0 }
 0x10a   : > { %v469_v46 = vadd.f32 %v2128_v60, %v468_v45  ;;  %v556_v49 = vmax.f32 %v466_v42, 0.0 }
 0x10b   : > { %v559_v48 = vmax.f32 %v477_v44, 0.0 }
 0x10c   : > { %v557_v50 = vmax.f32 %v469_v46, 0.0  ;;  %v2165_v46 = vld [vmem:[%s2405_s4] ss:$0 sm:$0xff] }
 0x10d   : > { %v583_v51 = vpack.c.bf16 %v559_v48, %v558_v47 }
 0x10e   : > { %v582_v52 = vpack.c.bf16 %v557_v50, %v556_v49  ;;  %v1642_v53 = vpop.f32.mrb[16].mxu0 }
 0x10f   : > { %v490_v54 = vadd.f32 %v1642_v53, %v2128_v60  ;;  %v481_v55 = vpop.f32.mrb[17].mxu0 }
 0x110   : > { %v482_v56 = vadd.f32 %v2128_v60, %v481_v55  ;;  %v1643_v57 = vpop.f32.mrb[18].mxu0  ;;  %1684 = vmatprep.mubr.bf16.mxu1 %v582_v52 }
 0x111   : > { %v493_v58 = vadd.f32 %v1643_v57, %v2128_v60  ;;  %v484_v59 = vpop.f32.mrb[19].mxu0  ;;  %1685 = vmatmul.mubr.bf16.gmra.mrb[8].mxu1 %v583_v51  ;;  %v562_v62 = vmax.f32 %v490_v54, 0.0 }
 0x112   : > { %v485_v61 = vadd.f32 %v2128_v60, %v484_v59  ;;  %v560_v0 = vmax.f32 %v482_v56, 0.0 }
 0x113   : > { %v563_v63 = vmax.f32 %v493_v58, 0.0 }
 0x114   : > { %v561_v1 = vmax.f32 %v485_v61, 0.0 }
 0x115   : > { %v585_v2 = vpack.c.bf16 %v563_v63, %v562_v62 }
 0x116   : > { %v584_v3 = vpack.c.bf16 %v561_v1, %v560_v0  ;;  %v1646_v4 = vpop.f32.mrb[20].mxu0 }
 0x117   : > { %v506_v5 = vadd.f32 %v1646_v4, %v2128_v60  ;;  %v497_v6 = vpop.f32.mrb[21].mxu0 }
 0x118   : > { %v498_v7 = vadd.f32 %v2128_v60, %v497_v6  ;;  %v1647_v8 = vpop.f32.mrb[22].mxu0  ;;  %1688 = vmatprep.mubr.bf16.mxu1 %v584_v3 }
 0x119   : > { %v509_v9 = vadd.f32 %v1647_v8, %v2128_v60  ;;  %v500_v10 = vpop.f32.mrb[23].mxu0  ;;  %1689 = vmatmul.mubr.bf16.gmra.mrb[12].mxu1 %v585_v2  ;;  %v566_v12 = vmax.f32 %v506_v5, 0.0 }
 0x11a   : > { %v501_v11 = vadd.f32 %v2128_v60, %v500_v10  ;;  %v564_v14 = vmax.f32 %v498_v7, 0.0 }
 0x11b   : > { %v567_v13 = vmax.f32 %v509_v9, 0.0 }
 0x11c   : > { %v565_v15 = vmax.f32 %v501_v11, 0.0 }
 0x11d   : > { %v587_v16 = vpack.c.bf16 %v567_v13, %v566_v12 }
 0x11e   : > { %v586_v17 = vpack.c.bf16 %v565_v15, %v564_v14  ;;  %v1650_v18 = vpop.f32.mrb[24].mxu0 }
 0x11f   : > { %v522_v19 = vadd.f32 %v1650_v18, %v2128_v60  ;;  %v513_v20 = vpop.f32.mrb[25].mxu0 }
 0x120   : > { %v514_v21 = vadd.f32 %v2128_v60, %v513_v20  ;;  %v1651_v22 = vpop.f32.mrb[26].mxu0  ;;  %1692 = vmatprep.mubr.bf16.mxu1 %v586_v17 }
 0x121   : > { %v525_v23 = vadd.f32 %v1651_v22, %v2128_v60  ;;  %v516_v24 = vpop.f32.mrb[27].mxu0  ;;  %1693 = vmatmul.mubr.bf16.gmra.mrb[16].mxu1 %v587_v16  ;;  %v570_v26 = vmax.f32 %v522_v19, 0.0 }
 0x122   : > { %v517_v25 = vadd.f32 %v2128_v60, %v516_v24  ;;  %v568_v28 = vmax.f32 %v514_v21, 0.0 }
 0x123   : > { %v571_v27 = vmax.f32 %v525_v23, 0.0 }
 0x124   : > { %v569_v29 = vmax.f32 %v517_v25, 0.0 }
 0x125   : > { %v589_v30 = vpack.c.bf16 %v571_v27, %v570_v26 }
 0x126   : > { %v588_v31 = vpack.c.bf16 %v569_v29, %v568_v28  ;;  %v1654_v32 = vpop.f32.mrb[28].mxu0 }
 0x127   : > { %v538_v33 = vadd.f32 %v1654_v32, %v2128_v60  ;;  %v529_v34 = vpop.f32.mrb[29].mxu0 }
 0x128   : > { %v530_v35 = vadd.f32 %v2128_v60, %v529_v34  ;;  %v1655_v36 = vpop.f32.mrb[30].mxu0  ;;  %1696 = vmatprep.mubr.bf16.mxu1 %v588_v31 }
 0x129   : > { %v541_v37 = vadd.f32 %v1655_v36, %v2128_v60  ;;  %v532_v38 = vpop.f32.mrb[31].mxu0  ;;  %1697 = vmatmul.mubr.bf16.gmra.mrb[20].mxu1 %v589_v30  ;;  %v574_v40 = vmax.f32 %v538_v33, 0.0 }
 0x12a   : > { %v533_v39 = vadd.f32 %v2128_v60, %v532_v38  ;;  %v572_v42 = vmax.f32 %v530_v35, 0.0 }
 0x12b   : > { %v575_v41 = vmax.f32 %v541_v37, 0.0 }
 0x12c   : > { %v573_v43 = vmax.f32 %v533_v39, 0.0 }
 0x12d   : > { %v591_v44 = vpack.c.bf16 %v575_v41, %v574_v40 }
 0x12e   : > { %v590_v45 = vpack.c.bf16 %v573_v43, %v572_v42 }
 0x130   : > { %1700 = vmatprep.mubr.bf16.mxu1 %v590_v45 }
 0x131   : > { %1701 = vmatmul.mubr.bf16.gmra.mrb[24].mxu1 %v591_v44 }
 0x1cc   : > { %v1674_v47 = vpop.f32.mrb[32].mxu0 }
 0x1cd   : > { %v706_v48 = vadd.f32 %v1674_v47, %v2165_v46  ;;  %v697_v49 = vpop.f32.mrb[33].mxu0 }
 0x1ce   : > { %v698_v50 = vadd.f32 %v2165_v46, %v697_v49  ;;  %v1675_v60 = vpop.f32.mrb[34].mxu0 }
 0x1cf   : > { %v826_v51 = vmul.f32 0.5, %v706_v48  ;;  %v709_v52 = vadd.f32 %v1675_v60, %v2165_v46  ;;  %v700_v53 = vpop.f32.mrb[35].mxu0 }
 0x1d0   : > { %v824_v54 = vmul.f32 0.5, %v698_v50  ;;  %v701_v55 = vadd.f32 %v2165_v46, %v700_v53 }
 0x1d1   : > { %1820 = vtanh.f32 %v826_v51  ;;  %v827_v56 = vmul.f32 0.5, %v709_v52 }
 0x1d2   : > { %1822 = vtanh.f32 %v824_v54  ;;  %v825_v57 = vmul.f32 0.5, %v701_v55 }
 0x1d3   : > { %1824 = vtanh.f32 %v827_v56 }
 0x1d4   : > { %1826 = vtanh.f32 %v825_v57  ;;  %v1678_v58 = vpop.f32.mrb[0].mxu1 }
 0x1d5   : > { %v722_v59 = vadd.f32 %v1678_v58, %v2165_v46  ;;  %v713_v61 = vpop.f32.mrb[1].mxu1 }
 0x1d6   : > { %v714_v62 = vadd.f32 %v2165_v46, %v713_v61  ;;  %v1679_v63 = vpop.f32.mrb[2].mxu1 }
 0x1d7   : > { %v830_v0 = vmul.f32 0.5, %v722_v59  ;;  %v725_v1 = vadd.f32 %v1679_v63, %v2165_v46  ;;  %v716_v2 = vpop.f32.mrb[3].mxu1 }
 0x1d8   : > { %v828_v3 = vmul.f32 0.5, %v714_v62  ;;  %v717_v4 = vadd.f32 %v2165_v46, %v716_v2 }
 0x1d9   : > { %1828 = vtanh.f32 %v830_v0  ;;  %v831_v5 = vmul.f32 0.5, %v725_v1 }
 0x1da   : > { %1830 = vtanh.f32 %v828_v3  ;;  %v829_v6 = vmul.f32 0.5, %v717_v4 }
 0x1db   : > { %v1821_v7 = vpop.eup %1820  ;;  %1832 = vtanh.f32 %v831_v5 }
 0x1dc   : > { %v1823_v8 = vpop.eup %1822  ;;  %v890_v9 = vadd.f32 1.0, %v1821_v7  ;;  %1834 = vtanh.f32 %v829_v6  ;;  %v1682_v10 = vpop.f32.mrb[4].mxu1 }
 0x1dd   : > { %v1825_v11 = vpop.eup %1824  ;;  %v888_v12 = vadd.f32 1.0, %v1823_v8  ;;  %v738_v13 = vadd.f32 %v1682_v10, %v2165_v46  ;;  %v729_v14 = vpop.f32.mrb[5].mxu1 }
 0x1de   : > { %v1827_v15 = vpop.eup %1826  ;;  %v922_v16 = vmul.f32 0.5, %v890_v9  ;;  %v891_v17 = vadd.f32 1.0, %v1825_v11  ;;  %v730_v18 = vadd.f32 %v2165_v46, %v729_v14  ;;  %v1683_v19 = vpop.f32.mrb[6].mxu1 }
 0x1df   : > { %v920_v20 = vmul.f32 0.5, %v888_v12  ;;  %v889_v21 = vadd.f32 1.0, %v1827_v15  ;;  %v834_v22 = vmul.f32 0.5, %v738_v13  ;;  %v741_v23 = vadd.f32 %v1683_v19, %v2165_v46  ;;  %v732_v24 = vpop.f32.mrb[7].mxu1 }
 0x1e0   : > { %v1539_v25 = vpack.c.bf16 %v922_v16, %v922_v16  ;;  %v923_v26 = vmul.f32 0.5, %v891_v17  ;;  %v832_v27 = vmul.f32 0.5, %v730_v18  ;;  %v733_v28 = vadd.f32 %v2165_v46, %v732_v24 }
 0x1e1   : > { %v1537_v29 = vpack.c.bf16 %v920_v20, %v920_v20  ;;  %v921_v30 = vmul.f32 0.5, %v889_v21  ;;  %1836 = vtanh.f32 %v834_v22  ;;  %v835_v31 = vmul.f32 0.5, %v741_v23 }
 0x1e2   : > { %1083 = vst.msk [vmem:[%s2180_s18 + $0x8] sm:$0xf] %vm1080_vm1, %v1539_v25  ;;  %v1540_v32 = vpack.c.bf16 %v923_v26, %v923_v26  ;;  %1838 = vtanh.f32 %v832_v27  ;;  %v833_v33 = vmul.f32 0.5, %v733_v28 }
 0x1e3   : > { %v1829_v34 = vpop.eup %1828  ;;  %1081 = vst.msk [vmem:[%s2180_s18] sm:$0xf] %vm1080_vm1, %v1537_v29  ;;  %v1538_v35 = vpack.c.bf16 %v921_v30, %v921_v30  ;;  %1840 = vtanh.f32 %v835_v31 }
 0x1e4   : > { %v1831_v36 = vpop.eup %1830  ;;  %1084 = vst.msk [vmem:[%s2180_s18 + $0xc] sm:$0xf] %vm1080_vm1, %v1540_v32  ;;  %v894_v37 = vadd.f32 1.0, %v1829_v34  ;;  %1842 = vtanh.f32 %v833_v33  ;;  %v1686_v38 = vpop.f32.mrb[8].mxu1 }
 0x1e5   : > { %v1833_v39 = vpop.eup %1832  ;;  %1082 = vst.msk [vmem:[%s2180_s18 + $0x4] sm:$0xf] %vm1080_vm1, %v1538_v35  ;;  %v892_v40 = vadd.f32 1.0, %v1831_v36  ;;  %v754_v41 = vadd.f32 %v1686_v38, %v2165_v46  ;;  %v745_v42 = vpop.f32.mrb[9].mxu1 }
 0x1e6   : > { %v1835_v43 = vpop.eup %1834  ;;  %v926_v44 = vmul.f32 0.5, %v894_v37  ;;  %v895_v45 = vadd.f32 1.0, %v1833_v39  ;;  %v746_v47 = vadd.f32 %v2165_v46, %v745_v42  ;;  %v1687_v48 = vpop.f32.mrb[10].mxu1 }
 0x1e7   : > { %v924_v49 = vmul.f32 0.5, %v892_v40  ;;  %v893_v50 = vadd.f32 1.0, %v1835_v43  ;;  %v838_v60 = vmul.f32 0.5, %v754_v41  ;;  %v757_v51 = vadd.f32 %v1687_v48, %v2165_v46  ;;  %v748_v52 = vpop.f32.mrb[11].mxu1 }
 0x1e8   : > { %v1543_v53 = vpack.c.bf16 %v926_v44, %v926_v44  ;;  %v927_v54 = vmul.f32 0.5, %v895_v45  ;;  %v836_v55 = vmul.f32 0.5, %v746_v47  ;;  %v749_v56 = vadd.f32 %v2165_v46, %v748_v52 }
 0x1e9   : > { %v1541_v57 = vpack.c.bf16 %v924_v49, %v924_v49  ;;  %v925_v58 = vmul.f32 0.5, %v893_v50  ;;  %1844 = vtanh.f32 %v838_v60  ;;  %v839_v59 = vmul.f32 0.5, %v757_v51 }
 0x1ea   : > { %1087 = vst.msk [vmem:[%s2180_s18 + $0x18] sm:$0xf] %vm1080_vm1, %v1543_v53  ;;  %v1544_v61 = vpack.c.bf16 %v927_v54, %v927_v54  ;;  %1846 = vtanh.f32 %v836_v55  ;;  %v837_v62 = vmul.f32 0.5, %v749_v56 }
 0x1eb   : > { %v1837_v63 = vpop.eup %1836  ;;  %1085 = vst.msk [vmem:[%s2180_s18 + $0x10] sm:$0xf] %vm1080_vm1, %v1541_v57  ;;  %v1542_v0 = vpack.c.bf16 %v925_v58, %v925_v58  ;;  %1848 = vtanh.f32 %v839_v59 }
 0x1ec   : > { %v1839_v1 = vpop.eup %1838  ;;  %1088 = vst.msk [vmem:[%s2180_s18 + $0x1c] sm:$0xf] %vm1080_vm1, %v1544_v61  ;;  %v898_v2 = vadd.f32 1.0, %v1837_v63  ;;  %1850 = vtanh.f32 %v837_v62  ;;  %v1690_v3 = vpop.f32.mrb[12].mxu1 }
 0x1ed   : > { %v1841_v4 = vpop.eup %1840  ;;  %1086 = vst.msk [vmem:[%s2180_s18 + $0x14] sm:$0xf] %vm1080_vm1, %v1542_v0  ;;  %v896_v5 = vadd.f32 1.0, %v1839_v1  ;;  %v770_v6 = vadd.f32 %v1690_v3, %v2165_v46  ;;  %v761_v7 = vpop.f32.mrb[13].mxu1 }
 0x1ee   : > { %v1843_v8 = vpop.eup %1842  ;;  %v930_v9 = vmul.f32 0.5, %v898_v2  ;;  %v899_v10 = vadd.f32 1.0, %v1841_v4  ;;  %v762_v11 = vadd.f32 %v2165_v46, %v761_v7  ;;  %v1691_v12 = vpop.f32.mrb[14].mxu1 }
 0x1ef   : > { %v928_v13 = vmul.f32 0.5, %v896_v5  ;;  %v897_v14 = vadd.f32 1.0, %v1843_v8  ;;  %v842_v15 = vmul.f32 0.5, %v770_v6  ;;  %v773_v16 = vadd.f32 %v1691_v12, %v2165_v46  ;;  %v764_v17 = vpop.f32.mrb[15].mxu1 }
 0x1f0   : > { %v1547_v18 = vpack.c.bf16 %v930_v9, %v930_v9  ;;  %v931_v19 = vmul.f32 0.5, %v899_v10  ;;  %v840_v20 = vmul.f32 0.5, %v762_v11  ;;  %v765_v21 = vadd.f32 %v2165_v46, %v764_v17 }
 0x1f1   : > { %v1545_v22 = vpack.c.bf16 %v928_v13, %v928_v13  ;;  %v929_v23 = vmul.f32 0.5, %v897_v14  ;;  %1852 = vtanh.f32 %v842_v15  ;;  %v843_v24 = vmul.f32 0.5, %v773_v16 }
 0x1f2   : > { %1091 = vst.msk [vmem:[%s2180_s18 + $0x28] sm:$0xf] %vm1080_vm1, %v1547_v18  ;;  %v1548_v25 = vpack.c.bf16 %v931_v19, %v931_v19  ;;  %1854 = vtanh.f32 %v840_v20  ;;  %v841_v26 = vmul.f32 0.5, %v765_v21 }
 0x1f3   : > { %v1845_v27 = vpop.eup %1844  ;;  %1089 = vst.msk [vmem:[%s2180_s18 + $0x20] sm:$0xf] %vm1080_vm1, %v1545_v22  ;;  %v1546_v28 = vpack.c.bf16 %v929_v23, %v929_v23  ;;  %1856 = vtanh.f32 %v843_v24 }
 0x1f4   : > { %v1847_v29 = vpop.eup %1846  ;;  %1092 = vst.msk [vmem:[%s2180_s18 + $0x2c] sm:$0xf] %vm1080_vm1, %v1548_v25  ;;  %v902_v30 = vadd.f32 1.0, %v1845_v27  ;;  %1858 = vtanh.f32 %v841_v26  ;;  %v1694_v31 = vpop.f32.mrb[16].mxu1 }
 0x1f5   : > { %v1849_v32 = vpop.eup %1848  ;;  %1090 = vst.msk [vmem:[%s2180_s18 + $0x24] sm:$0xf] %vm1080_vm1, %v1546_v28  ;;  %v900_v33 = vadd.f32 1.0, %v1847_v29  ;;  %v786_v34 = vadd.f32 %v1694_v31, %v2165_v46  ;;  %v777_v35 = vpop.f32.mrb[17].mxu1 }
 0x1f6   : > { %v1851_v36 = vpop.eup %1850  ;;  %v934_v37 = vmul.f32 0.5, %v902_v30  ;;  %v903_v38 = vadd.f32 1.0, %v1849_v32  ;;  %v778_v39 = vadd.f32 %v2165_v46, %v777_v35  ;;  %v1695_v40 = vpop.f32.mrb[18].mxu1 }
 0x1f7   : > { %v932_v41 = vmul.f32 0.5, %v900_v33  ;;  %v901_v42 = vadd.f32 1.0, %v1851_v36  ;;  %v846_v43 = vmul.f32 0.5, %v786_v34  ;;  %v789_v44 = vadd.f32 %v1695_v40, %v2165_v46  ;;  %v780_v45 = vpop.f32.mrb[19].mxu1 }
 0x1f8   : > { %v1551_v47 = vpack.c.bf16 %v934_v37, %v934_v37  ;;  %v935_v48 = vmul.f32 0.5, %v903_v38  ;;  %v844_v49 = vmul.f32 0.5, %v778_v39  ;;  %v781_v50 = vadd.f32 %v2165_v46, %v780_v45 }
 0x1f9   : > { %v1549_v60 = vpack.c.bf16 %v932_v41, %v932_v41  ;;  %v933_v51 = vmul.f32 0.5, %v901_v42  ;;  %1860 = vtanh.f32 %v846_v43  ;;  %v847_v52 = vmul.f32 0.5, %v789_v44 }
 0x1fa   : > { %1095 = vst.msk [vmem:[%s2180_s18 + $0x38] sm:$0xf] %vm1080_vm1, %v1551_v47  ;;  %v1552_v53 = vpack.c.bf16 %v935_v48, %v935_v48  ;;  %1862 = vtanh.f32 %v844_v49  ;;  %v845_v54 = vmul.f32 0.5, %v781_v50 }
 0x1fb   : > { %v1853_v55 = vpop.eup %1852  ;;  %1093 = vst.msk [vmem:[%s2180_s18 + $0x30] sm:$0xf] %vm1080_vm1, %v1549_v60  ;;  %v1550_v56 = vpack.c.bf16 %v933_v51, %v933_v51  ;;  %1864 = vtanh.f32 %v847_v52 }
 0x1fc   : > { %v1855_v57 = vpop.eup %1854  ;;  %1096 = vst.msk [vmem:[%s2180_s18 + $0x3c] sm:$0xf] %vm1080_vm1, %v1552_v53  ;;  %v906_v58 = vadd.f32 1.0, %v1853_v55  ;;  %1866 = vtanh.f32 %v845_v54  ;;  %v1698_v59 = vpop.f32.mrb[20].mxu1 }
 0x1fd   : > { %v1857_v61 = vpop.eup %1856  ;;  %1094 = vst.msk [vmem:[%s2180_s18 + $0x34] sm:$0xf] %vm1080_vm1, %v1550_v56  ;;  %v904_v62 = vadd.f32 1.0, %v1855_v57  ;;  %v802_v63 = vadd.f32 %v1698_v59, %v2165_v46  ;;  %v793_v0 = vpop.f32.mrb[21].mxu1 }
 0x1fe   : > { %v1859_v1 = vpop.eup %1858  ;;  %v938_v2 = vmul.f32 0.5, %v906_v58  ;;  %v907_v3 = vadd.f32 1.0, %v1857_v61  ;;  %v794_v4 = vadd.f32 %v2165_v46, %v793_v0  ;;  %v1699_v5 = vpop.f32.mrb[22].mxu1 }
 0x1ff   : > { %v936_v6 = vmul.f32 0.5, %v904_v62  ;;  %v905_v7 = vadd.f32 1.0, %v1859_v1  ;;  %v850_v8 = vmul.f32 0.5, %v802_v63  ;;  %v805_v9 = vadd.f32 %v1699_v5, %v2165_v46  ;;  %v796_v10 = vpop.f32.mrb[23].mxu1 }
 0x200   : > { %v1555_v11 = vpack.c.bf16 %v938_v2, %v938_v2  ;;  %v939_v12 = vmul.f32 0.5, %v907_v3  ;;  %v848_v13 = vmul.f32 0.5, %v794_v4  ;;  %v797_v14 = vadd.f32 %v2165_v46, %v796_v10 }
 0x201   : > { %v1553_v15 = vpack.c.bf16 %v936_v6, %v936_v6  ;;  %v937_v16 = vmul.f32 0.5, %v905_v7  ;;  %1868 = vtanh.f32 %v850_v8  ;;  %v851_v17 = vmul.f32 0.5, %v805_v9 }
 0x202   : > { %1099 = vst.msk [vmem:[%s2180_s18 + $0x48] sm:$0xf] %vm1080_vm1, %v1555_v11  ;;  %v1556_v18 = vpack.c.bf16 %v939_v12, %v939_v12  ;;  %1870 = vtanh.f32 %v848_v13  ;;  %v849_v19 = vmul.f32 0.5, %v797_v14 }
 0x203   : > { %v1861_v20 = vpop.eup %1860  ;;  %1097 = vst.msk [vmem:[%s2180_s18 + $0x40] sm:$0xf] %vm1080_vm1, %v1553_v15  ;;  %v1554_v21 = vpack.c.bf16 %v937_v16, %v937_v16  ;;  %1872 = vtanh.f32 %v851_v17 }
 0x204   : > { %v1863_v22 = vpop.eup %1862  ;;  %1100 = vst.msk [vmem:[%s2180_s18 + $0x4c] sm:$0xf] %vm1080_vm1, %v1556_v18  ;;  %v910_v23 = vadd.f32 1.0, %v1861_v20  ;;  %1874 = vtanh.f32 %v849_v19  ;;  %v1702_v24 = vpop.f32.mrb[24].mxu1 }
 0x205   : > { %v1865_v25 = vpop.eup %1864  ;;  %1098 = vst.msk [vmem:[%s2180_s18 + $0x44] sm:$0xf] %vm1080_vm1, %v1554_v21  ;;  %v908_v26 = vadd.f32 1.0, %v1863_v22  ;;  %v818_v27 = vadd.f32 %v1702_v24, %v2165_v46  ;;  %v809_v28 = vpop.f32.mrb[25].mxu1 }
 0x206   : > { %v1867_v29 = vpop.eup %1866  ;;  %v942_v30 = vmul.f32 0.5, %v910_v23  ;;  %v911_v31 = vadd.f32 1.0, %v1865_v25  ;;  %v810_v32 = vadd.f32 %v2165_v46, %v809_v28  ;;  %v1703_v33 = vpop.f32.mrb[26].mxu1 }
 0x207   : > { %v940_v34 = vmul.f32 0.5, %v908_v26  ;;  %v909_v35 = vadd.f32 1.0, %v1867_v29  ;;  %v854_v36 = vmul.f32 0.5, %v818_v27  ;;  %v821_v37 = vadd.f32 %v1703_v33, %v2165_v46  ;;  %v812_v38 = vpop.f32.mrb[27].mxu1 }
 0x208   : > { %v1559_v39 = vpack.c.bf16 %v942_v30, %v942_v30  ;;  %v943_v40 = vmul.f32 0.5, %v911_v31  ;;  %v852_v41 = vmul.f32 0.5, %v810_v32  ;;  %v813_v42 = vadd.f32 %v2165_v46, %v812_v38 }
 0x209   : > { %v1557_v43 = vpack.c.bf16 %v940_v34, %v940_v34  ;;  %v941_v44 = vmul.f32 0.5, %v909_v35  ;;  %1876 = vtanh.f32 %v854_v36  ;;  %v855_v45 = vmul.f32 0.5, %v821_v37 }
 0x20a   : > { %1103 = vst.msk [vmem:[%s2180_s18 + $0x58] sm:$0xf] %vm1080_vm1, %v1559_v39  ;;  %v1560_v47 = vpack.c.bf16 %v943_v40, %v943_v40  ;;  %1878 = vtanh.f32 %v852_v41  ;;  %v853_v48 = vmul.f32 0.5, %v813_v42 }
 0x20b   : > { %v1869_v49 = vpop.eup %1868  ;;  %1101 = vst.msk [vmem:[%s2180_s18 + $0x50] sm:$0xf] %vm1080_vm1, %v1557_v43  ;;  %v1558_v50 = vpack.c.bf16 %v941_v44, %v941_v44  ;;  %1880 = vtanh.f32 %v855_v45 }
 0x20c   : > { %v1871_v60 = vpop.eup %1870  ;;  %1104 = vst.msk [vmem:[%s2180_s18 + $0x5c] sm:$0xf] %vm1080_vm1, %v1560_v47  ;;  %v914_v46 = vadd.f32 1.0, %v1869_v49  ;;  %1882 = vtanh.f32 %v853_v48 }
 0x20d   : > { %v1873_v51 = vpop.eup %1872  ;;  %1102 = vst.msk [vmem:[%s2180_s18 + $0x54] sm:$0xf] %vm1080_vm1, %v1558_v50  ;;  %v912_v52 = vadd.f32 1.0, %v1871_v60 }
 0x20e   : > { %v1875_v53 = vpop.eup %1874  ;;  %v946_v54 = vmul.f32 0.5, %v914_v46  ;;  %v915_v55 = vadd.f32 1.0, %v1873_v51 }
 0x20f   : > { %v944_v56 = vmul.f32 0.5, %v912_v52  ;;  %v913_v57 = vadd.f32 1.0, %v1875_v53 }
 0x210   : > { %v1563_v58 = vpack.c.bf16 %v946_v54, %v946_v54  ;;  %v947_v59 = vmul.f32 0.5, %v915_v55 }
 0x211   : > { %v1561_v61 = vpack.c.bf16 %v944_v56, %v944_v56  ;;  %v945_v62 = vmul.f32 0.5, %v913_v57 }
 0x212   : > { %1107 = vst.msk [vmem:[%s2180_s18 + $0x68] sm:$0xf] %vm1080_vm1, %v1563_v58  ;;  %v1564_v63 = vpack.c.bf16 %v947_v59, %v947_v59 }
 0x213   : > { %v1877_v0 = vpop.eup %1876  ;;  %1105 = vst.msk [vmem:[%s2180_s18 + $0x60] sm:$0xf] %vm1080_vm1, %v1561_v61  ;;  %v1562_v1 = vpack.c.bf16 %v945_v62, %v945_v62 }
 0x214   : > { %v1879_v2 = vpop.eup %1878  ;;  %1108 = vst.msk [vmem:[%s2180_s18 + $0x6c] sm:$0xf] %vm1080_vm1, %v1564_v63  ;;  %v918_v3 = vadd.f32 1.0, %v1877_v0 }
 0x215   : > { %v1881_v4 = vpop.eup %1880  ;;  %1106 = vst.msk [vmem:[%s2180_s18 + $0x64] sm:$0xf] %vm1080_vm1, %v1562_v1  ;;  %v916_v5 = vadd.f32 1.0, %v1879_v2 }
 0x216   : > { %v1883_v6 = vpop.eup %1882  ;;  %v950_v7 = vmul.f32 0.5, %v918_v3  ;;  %v919_v8 = vadd.f32 1.0, %v1881_v4 }
 0x217   : > { %v948_v9 = vmul.f32 0.5, %v916_v5  ;;  %v917_v10 = vadd.f32 1.0, %v1883_v6  ;;  %1119 = sbr.rel (!%p2027_p4) target bundleno = 612 (0x264), region = 44 }
 0x218   : > { %v1567_v11 = vpack.c.bf16 %v950_v7, %v950_v7  ;;  %v951_v12 = vmul.f32 0.5, %v919_v8 }
 0x219   : > { %v1565_v13 = vpack.c.bf16 %v948_v9, %v948_v9  ;;  %v949_v14 = vmul.f32 0.5, %v917_v10 }
 0x21a   : > { %1111 = vst.msk [vmem:[%s2180_s18 + $0x78] sm:$0xf] %vm1080_vm1, %v1567_v11  ;;  %v1568_v15 = vpack.c.bf16 %v951_v12, %v951_v12 }
 0x21b   : > { %1109 = vst.msk [vmem:[%s2180_s18 + $0x70] sm:$0xf] %vm1080_vm1, %v1565_v13  ;;  %v1566_v16 = vpack.c.bf16 %v949_v14, %v949_v14 }
 0x21c   : > { %1112 = vst.msk [vmem:[%s2180_s18 + $0x7c] sm:$0xf] %vm1080_vm1, %v1568_v15 }
 0x21d   : > { %1110 = vst.msk [vmem:[%s2180_s18 + $0x74] sm:$0xf] %vm1080_vm1, %v1566_v16 }
 0x21e   : > { %s2415_s24 = smov (!%p1122_p8, %s1121_s24), 32 }
 0x21f   : > { %s1522_s7 = sshll.u32 %s2415_s24, 6 }
 0x220   : > { %p1525_p9 = scmp.eq.s32.totalorder %s1522_s7, 0 }
 0x221   : > { %s2279_s8 = sshrl.u32 (!%p1525_p9), %s2415_s24, 5 }
 0x222   : > { %1130 = sbr.rel (%p1525_p9) target bundleno = 612 (0x264), region = 48  ;;  %p1526_p10 = scmp.le.s32.totalorder (!%p1525_p9), %s2279_s8, 0 }
 0x229   : > { %1407 = sbr.rel (%p1526_p10) target bundleno = 591 (0x24f), region = 120  ;;  %s2408_s21 = smov (!%p1526_p10), %s2273_s6 }
 0x22a   : > { %s2409_s26 = smov (!%p1526_p10), %s2180_s18  ;;  %s2288_s29 = smov (!%p1526_p10), 0  }
 0x22b   : > { %s2290_s9 = smov (!%p1526_p10), 0  }
 0x230 LB: >> { %v1146_v17 = vld [vmem:[%s1946_s26] sm:$0xf]  ;;  %v1148_v18 = vld [vmem:[%s1946_s26 + $0x4] sm:$0xf]  ;;  %v1150_v19 = vld [vmem:[%s1946_s26 + $0x8] sm:$0xf]  ;;  %s1954_s9 = sphi %s2290_s9, %s1140_s9   ;;  %s1950_s29 = sphi %s2288_s29, %s2410_s29   ;;  %s1946_s26 = sphi %s2409_s26, %s1215_s26   ;;  %s1942_s21 = sphi %s2408_s21, %s1216_s21  }
 0x231   : >> { %1147 = vst [vmem:[%s1942_s21] sm:$0xf] %v1146_v17  ;;  %1149 = vst [vmem:[%s1942_s21 + $0x4] sm:$0xf] %v1148_v18  ;;  %v1152_v20 = vld [vmem:[%s1946_s26 + $0xc] sm:$0xf]  ;;  %s1210_s10 = sadd.s32 1, %s1950_s29 }
 0x232   : >> { %1151 = vst [vmem:[%s1942_s21 + $0x8] sm:$0xf] %v1150_v19  ;;  %v1154_v21 = vld [vmem:[%s1946_s26 + $0x10] sm:$0xf]  ;;  %v1156_v22 = vld [vmem:[%s1946_s26 + $0x14] sm:$0xf]  ;;  %p1211_p11 = scmp.ge.s32.totalorder %s1210_s10, %s2279_s8 }
 0x233   : >> { %1153 = vst [vmem:[%s1942_s21 + $0xc] sm:$0xf] %v1152_v20  ;;  %1155 = vst [vmem:[%s1942_s21 + $0x10] sm:$0xf] %v1154_v21  ;;  %v1158_v23 = vld [vmem:[%s1946_s26 + $0x18] sm:$0xf] }
 0x234   : >> { %1157 = vst [vmem:[%s1942_s21 + $0x14] sm:$0xf] %v1156_v22  ;;  %v1160_v24 = vld [vmem:[%s1946_s26 + $0x1c] sm:$0xf]  ;;  %v1162_v25 = vld [vmem:[%s1946_s26 + $0x20] sm:$0xf] }
 0x235   : >> { %1159 = vst [vmem:[%s1942_s21 + $0x18] sm:$0xf] %v1158_v23  ;;  %1161 = vst [vmem:[%s1942_s21 + $0x1c] sm:$0xf] %v1160_v24  ;;  %v1164_v26 = vld [vmem:[%s1946_s26 + $0x24] sm:$0xf] }
 0x236   : >> { %1163 = vst [vmem:[%s1942_s21 + $0x20] sm:$0xf] %v1162_v25  ;;  %v1166_v27 = vld [vmem:[%s1946_s26 + $0x28] sm:$0xf]  ;;  %v1168_v28 = vld [vmem:[%s1946_s26 + $0x2c] sm:$0xf] }
 0x237   : >> { %1165 = vst [vmem:[%s1942_s21 + $0x24] sm:$0xf] %v1164_v26  ;;  %1167 = vst [vmem:[%s1942_s21 + $0x28] sm:$0xf] %v1166_v27  ;;  %v1170_v29 = vld [vmem:[%s1946_s26 + $0x30] sm:$0xf] }
 0x238   : >> { %1169 = vst [vmem:[%s1942_s21 + $0x2c] sm:$0xf] %v1168_v28  ;;  %v1172_v30 = vld [vmem:[%s1946_s26 + $0x34] sm:$0xf]  ;;  %v1174_v31 = vld [vmem:[%s1946_s26 + $0x38] sm:$0xf] }
 0x239   : >> { %1171 = vst [vmem:[%s1942_s21 + $0x30] sm:$0xf] %v1170_v29  ;;  %1173 = vst [vmem:[%s1942_s21 + $0x34] sm:$0xf] %v1172_v30  ;;  %v1176_v32 = vld [vmem:[%s1946_s26 + $0x3c] sm:$0xf] }
 0x23a   : >> { %1175 = vst [vmem:[%s1942_s21 + $0x38] sm:$0xf] %v1174_v31  ;;  %v1178_v33 = vld [vmem:[%s1946_s26 + $0x40] sm:$0xf]  ;;  %v1180_v34 = vld [vmem:[%s1946_s26 + $0x44] sm:$0xf] }
 0x23b   : >> { %1177 = vst [vmem:[%s1942_s21 + $0x3c] sm:$0xf] %v1176_v32  ;;  %1179 = vst [vmem:[%s1942_s21 + $0x40] sm:$0xf] %v1178_v33  ;;  %v1182_v35 = vld [vmem:[%s1946_s26 + $0x48] sm:$0xf] }
 0x23c   : >> { %1181 = vst [vmem:[%s1942_s21 + $0x44] sm:$0xf] %v1180_v34  ;;  %v1184_v36 = vld [vmem:[%s1946_s26 + $0x4c] sm:$0xf]  ;;  %v1186_v37 = vld [vmem:[%s1946_s26 + $0x50] sm:$0xf] }
 0x23d   : >> { %1183 = vst [vmem:[%s1942_s21 + $0x48] sm:$0xf] %v1182_v35  ;;  %1185 = vst [vmem:[%s1942_s21 + $0x4c] sm:$0xf] %v1184_v36  ;;  %v1188_v38 = vld [vmem:[%s1946_s26 + $0x54] sm:$0xf] }
 0x23e   : >> { %1187 = vst [vmem:[%s1942_s21 + $0x50] sm:$0xf] %v1186_v37  ;;  %v1190_v39 = vld [vmem:[%s1946_s26 + $0x58] sm:$0xf]  ;;  %v1192_v40 = vld [vmem:[%s1946_s26 + $0x5c] sm:$0xf] }
 0x23f   : >> { %1189 = vst [vmem:[%s1942_s21 + $0x54] sm:$0xf] %v1188_v38  ;;  %1191 = vst [vmem:[%s1942_s21 + $0x58] sm:$0xf] %v1190_v39  ;;  %v1194_v41 = vld [vmem:[%s1946_s26 + $0x60] sm:$0xf] }
 0x240   : >> { %1193 = vst [vmem:[%s1942_s21 + $0x5c] sm:$0xf] %v1192_v40  ;;  %v1196_v42 = vld [vmem:[%s1946_s26 + $0x64] sm:$0xf]  ;;  %v1198_v43 = vld [vmem:[%s1946_s26 + $0x68] sm:$0xf] }
 0x241   : >> { %1195 = vst [vmem:[%s1942_s21 + $0x60] sm:$0xf] %v1194_v41  ;;  %1197 = vst [vmem:[%s1942_s21 + $0x64] sm:$0xf] %v1196_v42  ;;  %v1200_v44 = vld [vmem:[%s1946_s26 + $0x6c] sm:$0xf] }
 0x242   : >> { %1199 = vst [vmem:[%s1942_s21 + $0x68] sm:$0xf] %v1198_v43  ;;  %v1202_v45 = vld [vmem:[%s1946_s26 + $0x70] sm:$0xf]  ;;  %v1204_v47 = vld [vmem:[%s1946_s26 + $0x74] sm:$0xf] }
 0x243   : >> { %1201 = vst [vmem:[%s1942_s21 + $0x6c] sm:$0xf] %v1200_v44  ;;  %1203 = vst [vmem:[%s1942_s21 + $0x70] sm:$0xf] %v1202_v45  ;;  %v1206_v48 = vld [vmem:[%s1946_s26 + $0x78] sm:$0xf] }
 0x244   : >> { %1205 = vst [vmem:[%s1942_s21 + $0x74] sm:$0xf] %v1204_v47  ;;  %v1208_v49 = vld [vmem:[%s1946_s26 + $0x7c] sm:$0xf]  ;;  %1207 = vst [vmem:[%s1942_s21 + $0x78] sm:$0xf] %v1206_v48 }
 0x245   : >> { %1209 = vst [vmem:[%s1942_s21 + $0x7c] sm:$0xf] %v1208_v49  ;;  %s2417_s10 = smov (%p1211_p11, %s1210_s10), 0  ;;  %s1140_s9 = sadd.s32 1, %s1954_s9  }
 0x246   : >> { %s1527_s11 = sshll.u32 %s2417_s10, 7  ;;  %p1139_p12 = scmp.ge.s32.totalorder %s1140_s9, %s2279_s8 }
 0x247   : >> { %s1215_s26 = scalar_lea.vmem %s2180_s18, %s1527_s11 [#allocation2]   ;;  %s1216_s21 = scalar_lea.vmem %s2273_s6, %s1527_s11  }
 0x248   : >> { %s2410_s29 = smov %s2417_s10  ;;  %1142 = sbr.rel (!%p1139_p12) target bundleno = 560 (0x230), region = 126 }
 0x24f PF: > { %s2383_s12 = sand.u32 31, %s2415_s24   ;;  %s1570_s13 = sshll.u32 %s2279_s8, 7 }
 0x250   : > { %s1221_s14 = scalar_lea.vmem %s2180_s18, %s1570_s13 [#allocation2]   ;;  %s1223_s15 = scalar_lea.vmem %s2273_s6, %s1570_s13  }
 0x251   : > { %p1532_p13 = scmp.le.s32.totalorder %s2383_s12, 0 }
 0x252   : > { %s1956_s16 = smov (!%p1532_p13), %s1223_s15   ;;  %s1960_s17 = smov (!%p1532_p13), %s1221_s14  }
 0x253   : > { %1421 = sbr.rel (%p1532_p13) target bundleno = 612 (0x264), region = 131  ;;  %s1964_s20 = smov (!%p1532_p13), 0  }
 0x254   : > { %s1968_s23 = smov (!%p1532_p13), 0  }
 0x25a LB: >> { %v1233_v50 = vld [vmem:[%s1962_s17] sm:$0xf]  ;;  %s1235_s24 = sadd.s32 1, %s1966_s20  ;;  %s1227_s23 = sadd.s32 1, %s1970_s23   ;;  %s1970_s23 = sphi %s1968_s23, %s1227_s23   ;;  %s1966_s20 = sphi %s1964_s20, %s1965_s20   ;;  %s1962_s17 = sphi %s1960_s17, %s1240_s17   ;;  %s1958_s16 = sphi %s1956_s16, %s1241_s16  }
 0x25b   : >> { %1234 = vst [vmem:[%s1958_s16] sm:$0xf] %v1233_v50  ;;  %p1236_p0 = scmp.ge.s32.totalorder %s1235_s24, %s2383_s12  ;;  %p1226_p1 = scmp.ge.s32.totalorder %s1227_s23, %s2383_s12 }
 0x25d   : >> { %s2419_s24 = smov (%p1236_p0, %s1235_s24), 0  ;;  %1229 = sbr.rel (!%p1226_p1) target bundleno = 602 (0x25a), region = 137 }
 0x25e   : >> { %s1533_s18 = sshll.u32 %s2419_s24, 2  ;;  %s1965_s20 = smov %s2419_s24  }
 0x25f   : >> { %s1240_s17 = scalar_lea.vmem %s1221_s14, %s1533_s18 [#allocation2]   ;;  %s1241_s16 = scalar_lea.vmem %s1223_s15, %s1533_s18  }
 0x264 PF: > { %p12_p2 = scmp.ge.s32.totalorder %s2017_s22, 6   ;;  %s2411_s18 = smov %s1934_s19 }
 0x265   : > { %s2412_s19 = smov %s2025_s25  ;;  %s2413_s20 = smov %s2017_s22 }
 0x266   :  { %14 = sbr.rel (!%p12_p2) target bundleno = 2 (0x2), region = 148 }

</bundles_post_ra>
